<compile_context>
chip_gen: v6e
topology: v6e:2x2x1
jax: 0.10.0
libtpu: 0.0.40
codegen_flags: <defaults>
</compile_context>

<pallas_src>
import jax
import jax.numpy as jnp
import numpy as np
from jax.experimental import pallas as pl
from jax.experimental.pallas import tpu as pltpu

ACTION_SPACE = 46      # mortal's fixed action space
FEATURES = 512         # version=1 -> heads take a 512-dim phi
N_PAD = 128            # lane-dense fused head width (a[0:46] | v at 46 | zeros)
MAX_BATCH_TILE = 512   # keep >=2 grid steps for v7x megacore on big batches


def _round_up(x, m):
    return (x + m - 1) // m * m


def _pick_tile(B):
    """Batch tile + padded batch. Small B: one block == full array (no pad)."""
    if B <= 32:
        return B, B
    # ~8 tiles for large batches (megacore sharding + pipeline), rows in
    # multiples of 32 so the int8 mask block respects (32, 128) tiling.
    tb = min(MAX_BATCH_TILE, _round_up(-(-B // 8), 32))
    return tb, _round_up(B, tb)


def dqn_kernel(phi_ref, w_ref, b_ref, mask_ref, q_ref):
    # Fused head matmul on the MXU: (TB, F)bf16 @ (F, 128)bf16 -> f32.
    logits = jnp.dot(phi_ref[...], w_ref[...],
                     preferred_element_type=jnp.float32) + b_ref[...]

    mask_i = mask_ref[...].astype(jnp.int32)   # (TB, 128); 0 on v lane & pad
    mask_b = mask_i != 0

    # v lives in lane ACTION_SPACE of the fused output; extract it with a
    # lane-iota masked reduce (XLU work hidden under the phi DMA / matmul).
    lane = jax.lax.broadcasted_iota(jnp.int32, logits.shape, dimension=1)
    v = jnp.sum(jnp.where(lane == ACTION_SPACE, logits, 0.0),
                axis=-1, keepdims=True)                       # (TB, 1)

    # a.masked_fill(~mask, 0).sum(-1, keepdim=True); padded lanes have mask=0.
    a_sum = jnp.sum(jnp.where(mask_b, logits, 0.0), axis=-1, keepdims=True)
    mask_sum = jnp.sum(mask_i.astype(jnp.float32), axis=-1, keepdims=True)
    mask_sum = jnp.maximum(mask_sum, 1.0)   # guard all-invalid (padded) rows
    a_mean = a_sum * pl.reciprocal(mask_sum, approx=False)

    q = v + logits - a_mean
    # Lane-dense store; invalid actions and all padded lanes become -inf.
    q_ref[...] = jnp.where(mask_b, q, -jnp.inf)


def pack_dqn_params(wv, bv, wa, ba):
    """One-time packing of the two heads into a fused (F,128) bf16 weight and
    a (1,128) f32 bias. Call at parameter-load time, not per forward."""
    F = wa.shape[0]
    A = wa.shape[1]
    assert F % 128 == 0 and A + 1 <= N_PAD
    w_cat = jnp.zeros((F, N_PAD), jnp.float32)
    w_cat = w_cat.at[:, :A].set(wa.astype(jnp.float32))
    w_cat = w_cat.at[:, A:A + 1].set(wv.reshape(F, 1).astype(jnp.float32))
    b_cat = jnp.zeros((1, N_PAD), jnp.float32)
    b_cat = b_cat.at[:, :A].set(ba.reshape(1, A).astype(jnp.float32))
    b_cat = b_cat.at[:, A:A + 1].set(bv.reshape(1, 1).astype(jnp.float32))
    return w_cat.astype(jnp.bfloat16), b_cat


def dqn_forward(phi, w_cat, b_cat, mask_bool, *, trim=True):
    """phi: (B, 512) [any float dtype, used as bf16], mask_bool: (B, 46) bool.
    w_cat/b_cat from pack_dqn_params. Returns (B, 46) f32 q (or the raw
    (B_pad, 128) -inf-padded slab if trim=False)."""
    B, F = phi.shape
    A = mask_bool.shape[1]
    assert F % 128 == 0 and A + 1 <= N_PAD

    tb, b_pad = _pick_tile(B)

    # Dominant stream: cast to bf16 (no-op if already bf16); only pad the tail
    # when the batch is not tile aligned -- no full zero+scatter copy.
    phi_b = phi.astype(jnp.bfloat16)
    if b_pad != B:
        phi_b = jnp.pad(phi_b, ((0, b_pad - B), (0, 0)))

    # int8 lane-padded mask: 4x fewer bytes than int32 on a mem-bound kernel.
    mask_p = jnp.zeros((b_pad, N_PAD), jnp.int8).at[:B, :A].set(
        mask_bool.astype(jnp.int8))

    cost = pl.CostEstimate(
        flops=2 * b_pad * F * N_PAD,
        transcendentals=0,
        bytes_accessed=(b_pad * F * 2          # phi (bf16)
                        + F * N_PAD * 2        # fused weights (bf16)
                        + N_PAD * 4            # fused bias
                        + b_pad * N_PAD * 1    # mask (int8)
                        + b_pad * N_PAD * 4),  # q
    )

    q_pad = pl.pallas_call(
        dqn_kernel,
        out_shape=jax.ShapeDtypeStruct((b_pad, N_PAD), jnp.float32),
        grid=(b_pad // tb,),
        in_specs=[
            pl.BlockSpec((tb, F), lambda i: (i, 0)),      # phi (streamed)
            pl.BlockSpec((F, N_PAD), lambda i: (0, 0)),   # weights (resident)
            pl.BlockSpec((1, N_PAD), lambda i: (0, 0)),   # bias (resident)
            pl.BlockSpec((tb, N_PAD), lambda i: (i, 0)),  # mask (streamed)
        ],
        out_specs=pl.BlockSpec((tb, N_PAD), lambda i: (i, 0)),
        compiler_params=pltpu.CompilerParams(
            dimension_semantics=("parallel",)),
        cost_estimate=cost,
    )(phi_b, w_cat, b_cat, mask_p)

    if not trim:
        return q_pad            # -inf pad lanes; argmax/softmax-safe
    if b_pad == B:
        return q_pad[:, :A]
    return q_pad[:B, :A]


def reference_forward(phi, wv, bv, wa, ba, mask_bool):
    # Matches the kernel's numerics: bf16 inputs, f32 accumulate/epilogue.
    phi = phi.astype(jnp.bfloat16).astype(jnp.float32)
    wv = wv.astype(jnp.bfloat16).astype(jnp.float32)
    wa = wa.astype(jnp.bfloat16).astype(jnp.float32)
    v = phi @ wv + bv
    a = phi @ wa + ba
    a_sum = jnp.sum(jnp.where(mask_bool, a, 0.0), axis=-1, keepdims=True)
    mask_sum = jnp.sum(mask_bool.astype(jnp.float32), axis=-1, keepdims=True)
    q = v + a - a_sum / mask_sum
    return jnp.where(mask_bool, q, -jnp.inf)


if __name__ == "__main__":
    key = jax.random.PRNGKey(0)
    k_phi, k_wv, k_bv, k_wa, k_ba, k_mask = jax.random.split(key, 6)

    B = 2
    phi = jax.random.normal(k_phi, (B, FEATURES), dtype=jnp.float32)

    # Deterministic synthetic parameters (shapes from nn.Linear(512,1)/(512,46)),
    # stored transposed so the kernel computes phi @ W + b == PyTorch phi @ W.T + b.
    wv = jax.random.normal(k_wv, (FEATURES, 1), dtype=jnp.float32) * 0.02
    bv = jax.random.normal(k_bv, (1, 1), dtype=jnp.float32) * 0.02
    wa = jax.random.normal(k_wa, (FEATURES, ACTION_SPACE), dtype=jnp.float32) * 0.02
    ba = jax.random.normal(k_ba, (1, ACTION_SPACE), dtype=jnp.float32) * 0.02

    # Boolean action mask; guarantee at least one valid action per row.
    mask = jax.random.bernoulli(k_mask, p=0.5, shape=(B, ACTION_SPACE))
    mask = mask.at[:, 0].set(True)

    # One-time parameter packing (hoisted out of the forward path).
    w_cat, b_cat = pack_dqn_params(wv, bv, wa, ba)

    fwd = jax.jit(dqn_forward)
    q = fwd(phi, w_cat, b_cat, mask)
    q = jax.block_until_ready(q)

    q_ref = reference_forward(phi, wv, bv, wa, ba, mask)
    np.testing.assert_allclose(np.asarray(q), np.asarray(q_ref),
                               rtol=1e-3, atol=1e-3)

    print("KERNEL_OK")
</pallas_src>

<mosaic_0001>
module attributes {stable_mosaic.version = 11 : i64} {
  func.func @dqn_kernel(%arg0: i32, %arg1: memref<2x512xbf16, #tpu.memory_space<vmem>>, %arg2: memref<512x128xbf16, #tpu.memory_space<vmem>>, %arg3: memref<1x128xf32, #tpu.memory_space<vmem>>, %arg4: memref<2x128xi8, #tpu.memory_space<vmem>>, %arg5: memref<2x128xf32, #tpu.memory_space<vmem>>) attributes {dimension_semantics = [#tpu.dimension_semantics<parallel>], iteration_bounds = array<i64: 1>, scalar_prefetch = 0 : i64, scratch_operands = 0 : i64, tpu.core_type = #tpu.core_type<tc>, window_params = [{transform_indices = @transform_0, window_bounds = array<i64: 2, 512>}, {pipeline_mode = #tpu.pipeline_mode<synchronous>, transform_indices = @transform_1, window_bounds = array<i64: 512, 128>}, {pipeline_mode = #tpu.pipeline_mode<synchronous>, transform_indices = @transform_2, window_bounds = array<i64: 1, 128>}, {transform_indices = @transform_3, window_bounds = array<i64: 2, 128>}, {transform_indices = @transform_4, window_bounds = array<i64: 2, 128>}]} {
    %c0 = arith.constant 0 : index
    %c0_0 = arith.constant 0 : index
    %0 = vector.load %arg1[%c0, %c0_0] : memref<2x512xbf16, #tpu.memory_space<vmem>>, vector<2x512xbf16>
    %c0_1 = arith.constant 0 : index
    %c0_2 = arith.constant 0 : index
    %1 = vector.load %arg2[%c0_1, %c0_2] : memref<512x128xbf16, #tpu.memory_space<vmem>>, vector<512x128xbf16>
    %cst = arith.constant dense<0.000000e+00> : vector<2x128xf32>
    %2 = tpu.matmul %0, %1, %cst {dimension_numbers = #tpu.dot_dimension_numbers<[1], [0], [0], [1], [0, 0, 1, 1], [], []>} : vector<2x512xbf16>, vector<512x128xbf16>, vector<2x128xf32> -> vector<2x128xf32>
    %c0_3 = arith.constant 0 : index
    %c0_4 = arith.constant 0 : index
    %3 = vector.load %arg3[%c0_3, %c0_4] : memref<1x128xf32, #tpu.memory_space<vmem>>, vector<1x128xf32>
    %4 = vector.broadcast %3 : vector<1x128xf32> to vector<2x128xf32>
    %5 = arith.addf %2, %4 : vector<2x128xf32>
    %c0_5 = arith.constant 0 : index
    %c0_6 = arith.constant 0 : index
    %6 = vector.load %arg4[%c0_5, %c0_6] : memref<2x128xi8, #tpu.memory_space<vmem>>, vector<2x128xi8>
    %7 = arith.extsi %6 : vector<2x128xi8> to vector<2x128xi32>
    %c0_i32 = arith.constant 0 : i32
    %8 = vector.broadcast %c0_i32 : i32 to vector<2x128xi32>
    %9 = arith.cmpi ne, %7, %8 : vector<2x128xi32>
    %10 = tpu.iota {dimensions = array<i32: 1>} : vector<2x128xi32>
    %c46_i32 = arith.constant 46 : i32
    %11 = vector.broadcast %c46_i32 : i32 to vector<2x128xi32>
    %12 = arith.cmpi eq, %10, %11 : vector<2x128xi32>
    %cst_7 = arith.constant 0.000000e+00 : f32
    %13 = vector.broadcast %cst_7 : f32 to vector<2x128xf32>
    %14 = arith.select %12, %5, %13 : vector<2x128xi1>, vector<2x128xf32>
    %cst_8 = arith.constant dense<0.000000e+00> : vector<2xf32>
    %15 = vector.multi_reduction <add>, %14, %cst_8 [1] : vector<2x128xf32> to vector<2xf32>
    %16 = vector.shape_cast %15 : vector<2xf32> to vector<2x1xf32>
    %cst_9 = arith.constant 0.000000e+00 : f32
    %17 = vector.broadcast %cst_9 : f32 to vector<2x128xf32>
    %18 = arith.select %9, %5, %17 : vector<2x128xi1>, vector<2x128xf32>
    %cst_10 = arith.constant dense<0.000000e+00> : vector<2xf32>
    %19 = vector.multi_reduction <add>, %18, %cst_10 [1] : vector<2x128xf32> to vector<2xf32>
    %20 = vector.shape_cast %19 : vector<2xf32> to vector<2x1xf32>
    %21 = arith.sitofp %7 : vector<2x128xi32> to vector<2x128xf32>
    %cst_11 = arith.constant dense<0.000000e+00> : vector<2xf32>
    %22 = vector.multi_reduction <add>, %21, %cst_11 [1] : vector<2x128xf32> to vector<2xf32>
    %23 = vector.shape_cast %22 : vector<2xf32> to vector<2x1xf32>
    %cst_12 = arith.constant 1.000000e+00 : f32
    %24 = vector.broadcast %cst_12 : f32 to vector<2x1xf32>
    %25 = arith.maximumf %23, %24 : vector<2x1xf32>
    %26 = tpu.reciprocal %25 : vector<2x1xf32> -> vector<2x1xf32>
    %27 = arith.mulf %20, %26 : vector<2x1xf32>
    %28 = vector.broadcast %16 : vector<2x1xf32> to vector<2x128xf32>
    %29 = arith.addf %28, %5 : vector<2x128xf32>
    %30 = vector.broadcast %27 : vector<2x1xf32> to vector<2x128xf32>
    %31 = arith.subf %29, %30 : vector<2x128xf32>
    %cst_13 = arith.constant 0xFF800000 : f32
    %32 = vector.broadcast %cst_13 : f32 to vector<2x128xf32>
    %33 = arith.select %9, %31, %32 : vector<2x128xi1>, vector<2x128xf32>
    %c0_14 = arith.constant 0 : index
    %c0_15 = arith.constant 0 : index
    %34 = vector.load %arg5[%c0_14, %c0_15] : memref<2x128xf32, #tpu.memory_space<vmem>>, vector<2x128xf32>
    tpu.vector_store %arg5[%c0_14, %c0_15], %33 {strides = array<i32>} : memref<2x128xf32, #tpu.memory_space<vmem>>, vector<2x128xf32>,
    return
  }
  func.func @transform_0(%arg0: i32) -> (i32, i32) {
    %c0_i32 = arith.constant 0 : i32
    %c0_i32_0 = arith.constant 0 : i32
    return %arg0, %c0_i32 : i32, i32
  }
  func.func @transform_1(%arg0: i32) -> (i32, i32) {
    %c0_i32 = arith.constant 0 : i32
    %c0_i32_0 = arith.constant 0 : i32
    %c0_i32_1 = arith.constant 0 : i32
    return %c0_i32, %c0_i32_0 : i32, i32
  }
  func.func @transform_2(%arg0: i32) -> (i32, i32) {
    %c0_i32 = arith.constant 0 : i32
    %c0_i32_0 = arith.constant 0 : i32
    %c0_i32_1 = arith.constant 0 : i32
    return %c0_i32, %c0_i32_0 : i32, i32
  }
  func.func @transform_3(%arg0: i32) -> (i32, i32) {
    %c0_i32 = arith.constant 0 : i32
    %c0_i32_0 = arith.constant 0 : i32
    return %arg0, %c0_i32 : i32, i32
  }
  func.func @transform_4(%arg0: i32) -> (i32, i32) {
    %c0_i32 = arith.constant 0 : i32
    %c0_i32_0 = arith.constant 0 : i32
    return %arg0, %c0_i32 : i32, i32
  }
}

</mosaic_0001>

<bundles_post_ra>
// kernel: dqn_forward.1
= control target key start
LH: loop header
LB: loop body
LE: loop exit
PB: predicated region body
PF: predicated region fallthrough
CT: control target
= control target key end

     0   :  { %9 = vsyncpa [#allocation3], 0  ;;  %s664_s0 = inlined_call_operand.vmem [shape: bf16[2,512], index: 0, kind: input, shape index: {}]   ;;  %s665_s1 = inlined_call_operand.hbm [shape: bf16[512,128], index: 1, kind: input, shape index: {}]   ;;  %s666_s2 = inlined_call_operand.vmem [shape: f32[1,128], index: 2, kind: input, shape index: {}]   ;;  %s667_s3 = inlined_call_operand.vmem [shape: s8[2,128], index: 3, kind: input, shape index: {}]   ;;  %s668_s4 = inlined_call_operand.hbm [shape: f32[2,128], index: 4, kind: output, shape index: {}]  }
   0x1   :  { %10 = vsyncpa [#allocation4], 0  ;;  %s608_s15 = smov [#allocation2]  }
   0x2   :  { %s18_s16 = sshll.u32 %s608_s15, 4  ;;  %s19_s16 = int_to_ptr.vmem [resolvable:$true] %s18_s16 }
   0x3   :  { %s572_s17 = scalar_lea.vmem %s19_s16, 4096  ;;  %p577_p1 = scmp.lt.s32.totalorder %s19_s16, %s19_s16 }
   0x4   :  { %p573_p0 = scmp.ne.s32.totalorder %s19_s16, %s572_s17  ;;  %p578_p2 = scmp.lt.s32.totalorder %s572_s17, %s572_s17 }
   0x6   :  { %p579_p3 = por %p578_p2, %p577_p1 }
   0x8   :  { %p580_p4 = pnand %p579_p3, %p573_p0 }
   0xa   :  { %583 = shalt.err (!%p580_p4)
}
   0xb   :  { %s609_s18 = smov 64   ;;  %s610_s19 = smov 4  }
   0xc   :  { %24 = dma.hbm_to_vmem [thread:$0]  %s665_s1, 4096, %s19_s16, [#allocation3], %s609_s18, %s609_s18, %s610_s19  }
   0xd   :  { %604 = dma.done.wait [#allocation3], 4096  }
   0xe   :  { %605 = vsyncadd [#allocation3], 4294963200  ;;  %v530_v0 = vld [vmem:[#allocation2 + $0x78] sm:$0xff]   ;;  %v534_v4 = vld [vmem:[#allocation2 + $0x70] sm:$0xff]   ;;  %v611_v22 = vmov 1966171168   ;;  %v117_v24 = vlaneseq }
   0xf   :  { %v531_v1 = vld [vmem:[#allocation2 + $0xf8] sm:$0xff]   ;;  %481 = vmatprep.subr.bf16.mxu0 %v530_v0  ;;  %v535_v5 = vld [vmem:[#allocation2 + $0xf0] sm:$0xff]   ;;  %v538_v8 = vld [vmem:[#allocation2 + $0x68] sm:$0xff]   ;;  %v115_v23 = vunpack.c.l.s4 %v611_v22  ;;  %vm413_vm0 = vcmask 1041408  }
  0x10   :  { %v532_v2 = vld [vmem:[#allocation2 + $0x38] sm:$0xff]   ;;  %503 = vmatprep.subr.bf16.mxu1 %v531_v1  ;;  %v536_v6 = vld [vmem:[#allocation2 + $0x30] sm:$0xff]   ;;  %v539_v9 = vld [vmem:[#allocation2 + $0xe8] sm:$0xff]   ;;  %v118_v30 = vshrl.u32 %v117_v24, 7  ;;  %v410_v52 = vand.u32 127, %v117_v24 }
  0x11   :  { %v533_v3 = vld [vmem:[#allocation2 + $0xb8] sm:$0xff]   ;;  %482 = vmatpush3.bf16.msra.mxu0 %v532_v2  ;;  %v537_v7 = vld [vmem:[#allocation2 + $0xb0] sm:$0xff]   ;;  %v540_v10 = vld [vmem:[#allocation2 + $0x28] sm:$0xff]   ;;  %v116_v29 = vunpack.c.0.s8 %v115_v23 }
  0x12   :  { %504 = vmatpush3.bf16.msra.mxu1 %v533_v3  ;;  %483 = vmatprep.subr.bf16.mxu0 %v534_v4  ;;  %v541_v11 = vld [vmem:[#allocation2 + $0xa8] sm:$0xff]   ;;  %v542_v12 = vld [vmem:[#allocation2 + $0x60] sm:$0xff]   ;;  %v546_v16 = vld [vmem:[#allocation2 + $0x58] sm:$0xff]   ;;  %vm411_vm2 = vcmp.eq.s32.totalorder %v410_v52, 46 }
  0x13   :  { %505 = vmatprep.subr.bf16.mxu1 %v535_v5  ;;  %v543_v13 = vld [vmem:[#allocation2 + $0xe0] sm:$0xff]   ;;  %v547_v17 = vld [vmem:[#allocation2 + $0xd8] sm:$0xff]   ;;  %v550_v20 = vld [vmem:[#allocation2 + $0x50] sm:$0xff]   ;;  %v119_v35 = vsub.s32 %v116_v29, %v118_v30 }
  0x14   :  { %v544_v14 = vld [vmem:[#allocation2 + $0x20] sm:$0xff]   ;;  %v548_v18 = vld [vmem:[#allocation2 + $0x18] sm:$0xff]   ;;  %v551_v21 = vld [vmem:[#allocation2 + $0xd0] sm:$0xff]  }
  0x15   :  { %484 = vmatpush3.bf16.msra.mxu0 %v536_v6  ;;  %v545_v15 = vld [vmem:[#allocation2 + $0xa0] sm:$0xff]   ;;  %v549_v19 = vld [vmem:[#allocation2 + $0x98] sm:$0xff]   ;;  %v552_v25 = vld [vmem:[#allocation2 + $0x10] sm:$0xff]  }
  0x16   :  { %506 = vmatpush3.bf16.msra.mxu1 %v537_v7  ;;  %485 = vmatprep.subr.bf16.mxu0 %v538_v8  ;;  %v553_v26 = vld [vmem:[#allocation2 + $0x90] sm:$0xff]   ;;  %v554_v27 = vld [vmem:[#allocation2 + $0x48] sm:$0xff]   ;;  %v558_v33 = vld [vmem:[#allocation2 + $0x40] sm:$0xff]  }
  0x17   :  { %507 = vmatprep.subr.bf16.mxu1 %v539_v9  ;;  %v555_v28 = vld [vmem:[#allocation2 + $0xc8] sm:$0xff]   ;;  %v559_v34 = vld [vmem:[#allocation2 + $0xc0] sm:$0xff]  }
  0x18   :  { %v556_v31 = vld [vmem:[#allocation2 + $0x8] sm:$0xff]   ;;  %v560_v36 = vld [vmem:[#allocation2] sm:$0xff]  }
  0x19   :  { %486 = vmatpush3.bf16.msra.mxu0 %v540_v10  ;;  %v557_v32 = vld [vmem:[#allocation2 + $0x88] sm:$0xff]   ;;  %v561_v37 = vld [vmem:[#allocation2 + $0x80] sm:$0xff]  }
  0x1a   :  { %508 = vmatpush3.bf16.msra.mxu1 %v541_v11  ;;  %487 = vmatprep.subr.bf16.mxu0 %v542_v12  ;;  %v448_v38 = vld.sshfl [vmem:[%s664_s0] sm:$0x33 pattern:$0x75316420] }
  0x1b   :  { %509 = vmatprep.subr.bf16.mxu1 %v543_v13  ;;  %v406_v39 = vld [vmem:[%s667_s3] sm:$0x1]  ;;  %v113_v40 = vcombine.high %v448_v38, %v448_v38  ;;  %v120_v41 = vrot.slane %v448_v38, %v119_v35 }
  0x1c   :  { %v407_v42 = vunpack.c.0.s8 %v406_v39  ;;  %v447_v50 = vld [vmem:[%s666_s2] ss:$0 sm:$0xff]  ;;  %s612_s2 = smov [#allocation5]  }
  0x1d   :  { %488 = vmatpush3.bf16.msra.mxu0 %v544_v14  ;;  %v127_v43 = vrot.slane %v113_v40, %v119_v35  ;;  %v128_v45 = vcombine.high %v120_v41, %v120_v41  ;;  %s438_s25 = sshll.u32 %s612_s2, 4  ;;  %s439_s25 = int_to_ptr.vmem [resolvable:$true] %s438_s25 }
  0x1e   :  { %510 = vmatpush3.bf16.msra.mxu1 %v545_v15  ;;  %489 = vmatprep.subr.bf16.mxu0 %v546_v16  ;;  %v421_v44 = vcvt.s32.f32 %v407_v42  ;;  %vm651_vm1 = vcmp.ne.s32.totalorder %v407_v42, 0  ;;  %s584_s26 = scalar_lea.vmem %s439_s25, 32  ;;  %p589_p6 = scmp.lt.s32.totalorder %s439_s25, %s439_s25 }
  0x1f   :  { %511 = vmatprep.subr.bf16.mxu1 %v547_v17  ;;  %358 = vmatprep.mubr.bf16.mxu0 %v127_v43  ;;  %v129_v46 = vcombine.high %v127_v43, %v127_v43  ;;  %p585_p5 = scmp.ne.s32.totalorder %s439_s25, %s584_s26  ;;  %p590_p7 = scmp.lt.s32.totalorder %s584_s26, %s584_s26 }
  0x20   :  { %v422_v47 = vsel %vm413_vm0, %v421_v44, 0.0 }
  0x21   :  { %490 = vmatpush3.bf16.msra.mxu0 %v548_v18  ;;  %423 = vadd.xlane.f32.xlu0 %v422_v47  ;;  %p591_p8 = por %p590_p7, %p589_p6 }
  0x22   :  { %512 = vmatpush3.bf16.msra.mxu1 %v549_v19  ;;  %491 = vmatprep.subr.bf16.mxu0 %v550_v20 }
  0x23   :  { %513 = vmatprep.subr.bf16.mxu1 %v551_v21  ;;  %398 = vmatprep.mubr.bf16.mxu1 %v129_v46  ;;  %p592_p9 = pnand %p591_p8, %p585_p5 }
  0x25   :  { %492 = vmatpush3.bf16.msra.mxu0 %v552_v25 }
  0x26   :  { %514 = vmatpush3.bf16.msra.mxu1 %v553_v26  ;;  %493 = vmatprep.subr.bf16.mxu0 %v554_v27 }
  0x27   :  { %515 = vmatprep.subr.bf16.mxu1 %v555_v28 }
  0x29   :  { %494 = vmatpush3.bf16.msra.mxu0 %v556_v31 }
  0x2a   :  { %516 = vmatpush3.bf16.msra.mxu1 %v557_v32  ;;  %495 = vmatprep.subr.bf16.mxu0 %v558_v33 }
  0x2b   :  { %517 = vmatprep.subr.bf16.mxu1 %v559_v34 }
  0x2d   :  { %496 = vmatpush3.bf16.msra.mxu0 %v560_v36 }
  0x2e   :  { %518 = vmatpush3.bf16.msra.mxu1 %v561_v37 }
  0x30   :  { %359 = vmatmul.mubr.bf16.vlgmr.msra.gmra.mxu0 %v120_v41 }
  0x31   :  { %399 = vmatmul.mubr.bf16.vlgmr.msra.gmra.mxu1 %v128_v45 }
  0xaa   :  { %v424_v3 = vpop.xlane.xlu0 %423 }
  0xab   :  { %v425_v4 = vmax.f32 %v424_v3, 1.0 }
  0xad   :  { %562 = vrcp.f32 %v425_v4 }
  0xba   :  { %v563_v5 = vpop.eup %562 }
  0xf0   :  { %v497_v48 = vpop.f32.mrf.mxu0 }
  0xf1   :  { %v519_v49 = vpop.f32.mrf.mxu1 }
  0xf2   :  { %v498_v51 = vpop.f32.mrf.mxu0 }
  0xf3   :  { %v499_v53 = vadd.f32 %v498_v51, %v497_v48  ;;  %v520_v54 = vpop.f32.mrf.mxu1 }
  0xf4   :  { %v500_v55 = vpop.f32.mrf.mxu0  ;;  %v521_v57 = vadd.f32 %v520_v54, %v519_v49 }
  0xf5   :  { %v361_v56 = vadd.f32 %v499_v53, %v447_v50  ;;  %v522_v58 = vpop.f32.mrf.mxu1 }
  0xf6   :  { %v501_v59 = vpop.f32.mrf.mxu0 }
  0xf7   :  { %v401_v61 = vadd.f32 %v521_v57, %v361_v56  ;;  %v523_v62 = vpop.f32.mrf.mxu1 }
  0xf9   :  { %v417_v63 = vsel %vm651_vm1, %v401_v61, 0.0  ;;  %v412_v0 = vsel %vm411_vm2, %v401_v61, 0.0 }
  0xfa   :  { %v418_v1 = vsel %vm413_vm0, %v417_v63, 0.0  ;;  %v414_v2 = vsel %vm413_vm0, %v412_v0, 0.0 }
  0xfb   :  { %419 = vadd.xlane.f32.xlu1 %v418_v1  ;;  %415 = vadd.xlane.f32.xlu0 %v414_v2 }
 0x184   :  { %v420_v6 = vpop.xlane.xlu1 %419  ;;  %v416_v7 = vpop.xlane.xlu0 %415 }
 0x185   :  { %v427_v8 = vmul.f32 %v563_v5, %v420_v6  ;;  %v428_v9 = vadd.f32 %v416_v7, %v401_v61 }
 0x187   :  { %v429_v10 = vsub.f32 %v428_v9, %v427_v8 }
 0x189   :  { %v430_v11 = vsel %vm651_vm1, %v429_v10, -inf }
 0x18a   :  { %431 = vst [vmem:[#allocation5] sm:$0x3] %v430_v11 }
 0x18b   :  { %595 = shalt.err (!%p592_p9)
}
 0x18c   :  { %441 = dma.vmem_to_hbm [thread:$0]  %s439_s25, 32, %s668_s4, [#allocation4]  }
 0x18d   :  { %606 = dma.done.wait [#allocation4], 32  }
 0x18e   :  { %607 = vsyncadd [#allocation4], 4294967264 }
 0x18f   :  { %445 = vsyncpa [#allocation3], 1 }
 0x190   :  { %446 = vsyncpa [#allocation4], 1 }

</bundles_post_ra>
